<compile_context>
chip_gen: v7x
topology: tpu7x:2x2x1
jax: 0.10.0
libtpu: 0.0.40
codegen_flags: <defaults>
</compile_context>

<pallas_src>
import jax
import jax.numpy as jnp
from jax.experimental import pallas as pl
from jax.experimental.pallas import tpu as pltpu


_EPS = 1e-5
_MIN_PALLAS_ELEMS = 4096                 # below this, XLA fusion wins
_VMEM_LIMIT_BYTES = 32 * 1024 * 1024     # explicit; safe on v5e/v6e (128 MiB) and v7x (64 MiB)


def _round_up(x, m):
    return (x + m - 1) // m * m


def _choose_tile(np_rows, max_tile):
    """Largest multiple of 8 <= max_tile that evenly divides np_rows (or None)."""
    best = None
    t = 8
    while t <= max_tile:
        if np_rows % t == 0:
            best = t
        t += 8
    return best


def _make_stats_kernel(d, lane_w, n_true, eps):
    """Pass-1 kernel factory: accumulate sum/sumsq, emit fused scale/bias."""
    inv_n = 1.0 / float(n_true)

    def kernel(x_ref, gamma_ref, beta_ref, scale_ref, bias_ref, sum_ref, sq_ref):
        @pl.when(pl.program_id(0) == 0)
        def _():
            sum_ref[...] = jnp.zeros_like(sum_ref)
            sq_ref[...] = jnp.zeros_like(sq_ref)

        x = x_ref[...].astype(jnp.float32)           # (tile, lane_w)
        sum_ref[...] += jnp.sum(x, axis=0, keepdims=True)
        sq_ref[...] += jnp.sum(x * x, axis=0, keepdims=True)

        @pl.when(pl.program_id(0) == pl.num_programs(0) - 1)
        def _():
            s = sum_ref[...]                          # (1, lane_w)
            q = sq_ref[...]
            # Fold the `pack` lane-groups (each group of `d` lanes holds a
            # partial per-feature sum) so every lane carries the full total.
            # Static python loop -> unrolled at trace time; XLU slot, ~free.
            sh = d
            while sh < lane_w:
                s = s + pltpu.roll(s, shift=sh, axis=1)
                q = q + pltpu.roll(q, shift=sh, axis=1)
                sh *= 2
            mean = s * inv_n
            var = q * inv_n - mean * mean             # biased variance (training BN)
            scale = gamma_ref[...] * jax.lax.rsqrt(var + eps)
            scale_ref[...] = scale
            bias_ref[...] = beta_ref[...] - mean * scale

    return kernel


def _norm_kernel(scale_ref, bias_ref, x_ref, o_ref):
    """Pass-2 kernel: y = x * scale + bias (precombined affine)."""
    x = x_ref[...].astype(jnp.float32)
    o_ref[...] = (x * scale_ref[...] + bias_ref[...]).astype(o_ref.dtype)


def _bn1d_jnp(x, gamma, beta, eps=_EPS):
    """Plain-jnp fallback / reference (training-mode BN over last dim)."""
    shape = x.shape
    d = shape[-1]
    xf = x.reshape(-1, d).astype(jnp.float32)
    mean = jnp.mean(xf, axis=0, keepdims=True)
    var = jnp.mean((xf - mean) ** 2, axis=0, keepdims=True)
    y = (xf - mean) * jax.lax.rsqrt(var + eps) * gamma.astype(jnp.float32) \
        + beta.astype(jnp.float32)
    return y.astype(x.dtype).reshape(shape)


def bn1d_forward(x, gamma, beta, use_bn=True, *, max_tile_rows=1024,
                 min_pallas_elems=_MIN_PALLAS_ELEMS):
    """Pallas implementation of BN1d.forward."""
    if not use_bn:
        return x
    # TODO(synk): only training-mode batch statistics are implemented (this is
    # what the PyTorch module's forward exercises); eval-mode running stats are
    # not covered.

    if x.size < min_pallas_elems:
        # Tiny input: pallas_call launch / per-step overhead dominates.
        return _bn1d_jnp(x, gamma, beta)

    origin_shape = x.shape
    d = int(origin_shape[-1])
    x_flat = x.reshape(-1, d)
    n_true = x_flat.shape[0]

    # Lane-dense packing: pack `pack` logical rows per vreg row when D divides 128.
    pack = 128 // d if (d < 128 and 128 % d == 0) else 1
    lane_w = pack * d

    np_rows = -(-n_true // pack)                       # ceil(N / pack)
    tile = _choose_tile(np_rows, max_tile_rows)
    if tile is None:
        tile = min(max_tile_rows, _round_up(np_rows, 8))
    np_pad = _round_up(np_rows, tile)
    n_rows_pad = np_pad * pack

    if n_rows_pad != n_true:
        # Zero rows contribute nothing to sum / sumsq; divisor uses n_true.
        x_flat = jnp.pad(x_flat, ((0, n_rows_pad - n_true), (0, 0)))
    x_pk = x_flat.reshape(np_pad, lane_w)

    gamma_pk = jnp.tile(gamma.astype(jnp.float32).reshape(-1), pack).reshape(1, lane_w)
    beta_pk = jnp.tile(beta.astype(jnp.float32).reshape(-1), pack).reshape(1, lane_w)

    num_tiles = np_pad // tile

    # ---- pass 1: per-feature sum / sumsq -> fused (scale, bias) -----------
    scale, bias = pl.pallas_call(
        _make_stats_kernel(d, lane_w, n_true, _EPS),
        out_shape=(jax.ShapeDtypeStruct((1, lane_w), jnp.float32),
                   jax.ShapeDtypeStruct((1, lane_w), jnp.float32)),
        grid_spec=pltpu.PrefetchScalarGridSpec(
            num_scalar_prefetch=0,
            grid=(num_tiles,),
            in_specs=[
                pl.BlockSpec((tile, lane_w), lambda i: (i, 0)),
                pl.BlockSpec((1, lane_w), lambda i: (0, 0)),
                pl.BlockSpec((1, lane_w), lambda i: (0, 0)),
            ],
            out_specs=[
                pl.BlockSpec((1, lane_w), lambda i: (0, 0)),
                pl.BlockSpec((1, lane_w), lambda i: (0, 0)),
            ],
            scratch_shapes=[pltpu.VMEM((1, lane_w), jnp.float32),
                            pltpu.VMEM((1, lane_w), jnp.float32)],
        ),
        compiler_params=pltpu.CompilerParams(
            dimension_semantics=("arbitrary",),       # sequential accumulation
            vmem_limit_bytes=_VMEM_LIMIT_BYTES,
        ),
    )(x_pk, gamma_pk, beta_pk)

    # ---- pass 2: y = x * scale + bias, streamed & parallel over tiles ------
    out_pk = pl.pallas_call(
        _norm_kernel,
        out_shape=jax.ShapeDtypeStruct((np_pad, lane_w), x.dtype),
        grid_spec=pltpu.PrefetchScalarGridSpec(
            num_scalar_prefetch=0,
            grid=(num_tiles,),
            in_specs=[
                pl.BlockSpec((1, lane_w), lambda i: (0, 0)),
                pl.BlockSpec((1, lane_w), lambda i: (0, 0)),
                pl.BlockSpec((tile, lane_w), lambda i: (i, 0)),
            ],
            out_specs=pl.BlockSpec((tile, lane_w), lambda i: (i, 0)),
        ),
        compiler_params=pltpu.CompilerParams(
            dimension_semantics=("parallel",),        # shards across v7x's 2 TCs
            vmem_limit_bytes=_VMEM_LIMIT_BYTES,
        ),
    )(scale, bias, x_pk)

    out = out_pk.reshape(n_rows_pad, d)[:n_true]
    return out.reshape(origin_shape)


if __name__ == "__main__":
    out_dim = 32
    key = jax.random.PRNGKey(0)
    k1, k2, k3, k4 = jax.random.split(key, 4)

    # nn.BatchNorm1d default parameter init.
    gamma1 = jnp.ones((out_dim,), dtype=jnp.float32)
    beta1 = jnp.zeros((out_dim,), dtype=jnp.float32)

    # Case 1: Pallas path, single stats tile (batch=4, seq=256, hidden=32).
    x1 = jax.random.normal(k1, (4, 256, out_dim), dtype=jnp.float32)
    y1 = jax.block_until_ready(bn1d_forward(x1, gamma1, beta1, use_bn=True))
    assert jnp.allclose(y1, _bn1d_jnp(x1, gamma1, beta1), atol=1e-4, rtol=1e-4), \
        "case 1 mismatch vs reference"

    # Case 2: Pallas path, multi-tile pipeline (forced 512-row packed tiles)
    # with non-trivial affine parameters.
    gamma2 = 1.0 + 0.1 * jax.random.normal(k2, (out_dim,), dtype=jnp.float32)
    beta2 = 0.1 * jax.random.normal(k3, (out_dim,), dtype=jnp.float32)
    x2 = jax.random.normal(k4, (2, 8, 512, out_dim), dtype=jnp.float32)
    y2 = jax.block_until_ready(
        bn1d_forward(x2, gamma2, beta2, use_bn=True, max_tile_rows=512))
    assert jnp.allclose(y2, _bn1d_jnp(x2, gamma2, beta2), atol=1e-4, rtol=1e-4), \
        "case 2 mismatch vs reference"

    # Case 3: tiny input (2x8x32) -> jnp fallback path, plus use_bn=False passthrough.
    x3 = jax.random.normal(k1, (2, 8, out_dim), dtype=jnp.float32)
    y3 = jax.block_until_ready(bn1d_forward(x3, gamma1, beta1, use_bn=True))
    assert jnp.allclose(y3, _bn1d_jnp(x3, gamma1, beta1), atol=1e-4, rtol=1e-4), \
        "case 3 mismatch vs reference"
    assert jnp.allclose(bn1d_forward(x3, gamma1, beta1, use_bn=False), x3), \
        "use_bn=False must be identity"

    print("KERNEL_OK")
</pallas_src>

<mosaic_0001>
module attributes {stable_mosaic.version = 11 : i64} {
  func.func @kernel(%arg0: i32, %arg1: memref<256x128xf32, #tpu.memory_space<vmem>>, %arg2: memref<1x128xf32, #tpu.memory_space<vmem>>, %arg3: memref<1x128xf32, #tpu.memory_space<vmem>>, %arg4: memref<1x128xf32, #tpu.memory_space<vmem>>, %arg5: memref<1x128xf32, #tpu.memory_space<vmem>>, %arg6: memref<1x128xf32, #tpu.memory_space<vmem>>, %arg7: memref<1x128xf32, #tpu.memory_space<vmem>>) attributes {dimension_semantics = [#tpu.dimension_semantics<arbitrary>], iteration_bounds = array<i64: 1>, scalar_prefetch = 0 : i64, scratch_operands = 2 : i64, tpu.core_type = #tpu.core_type<tc>, window_params = [{transform_indices = @transform_0, window_bounds = array<i64: 256, 128>}, {pipeline_mode = #tpu.pipeline_mode<synchronous>, transform_indices = @transform_1, window_bounds = array<i64: 1, 128>}, {pipeline_mode = #tpu.pipeline_mode<synchronous>, transform_indices = @transform_2, window_bounds = array<i64: 1, 128>}, {pipeline_mode = #tpu.pipeline_mode<synchronous>, transform_indices = @transform_3, window_bounds = array<i64: 1, 128>}, {pipeline_mode = #tpu.pipeline_mode<synchronous>, transform_indices = @transform_4, window_bounds = array<i64: 1, 128>}]} {
    %c0_i32 = arith.constant 0 : i32
    %0 = arith.cmpi eq, %arg0, %c0_i32 : i32
    %1 = arith.extui %0 : i1 to i32
    %c0_i32_0 = arith.constant 0 : i32
    %2 = arith.cmpi ne, %1, %c0_i32_0 : i32
    scf.if %2 {
      %cst_13 = arith.constant 0.000000e+00 : f32
      %18 = vector.broadcast %cst_13 : f32 to vector<1x128xf32>
      %c0_14 = arith.constant 0 : index
      %c0_15 = arith.constant 0 : index
      %19 = vector.load %arg6[%c0_14, %c0_15] : memref<1x128xf32, #tpu.memory_space<vmem>>, vector<1x128xf32>
      tpu.vector_store %arg6[%c0_14, %c0_15], %18 {strides = array<i32>} : memref<1x128xf32, #tpu.memory_space<vmem>>, vector<1x128xf32>,
      %cst_16 = arith.constant 0.000000e+00 : f32
      %20 = vector.broadcast %cst_16 : f32 to vector<1x128xf32>
      %c0_17 = arith.constant 0 : index
      %c0_18 = arith.constant 0 : index
      %21 = vector.load %arg7[%c0_17, %c0_18] : memref<1x128xf32, #tpu.memory_space<vmem>>, vector<1x128xf32>
      tpu.vector_store %arg7[%c0_17, %c0_18], %20 {strides = array<i32>} : memref<1x128xf32, #tpu.memory_space<vmem>>, vector<1x128xf32>,
    } else {
    }
    %c0 = arith.constant 0 : index
    %c0_1 = arith.constant 0 : index
    %3 = vector.load %arg1[%c0, %c0_1] : memref<256x128xf32, #tpu.memory_space<vmem>>, vector<256x128xf32>
    %c0_2 = arith.constant 0 : index
    %c0_3 = arith.constant 0 : index
    %4 = vector.load %arg6[%c0_2, %c0_3] : memref<1x128xf32, #tpu.memory_space<vmem>>, vector<1x128xf32>
    %cst = arith.constant dense<0.000000e+00> : vector<128xf32>
    %5 = vector.multi_reduction <add>, %3, %cst [0] : vector<256x128xf32> to vector<128xf32>
    %6 = vector.shape_cast %5 : vector<128xf32> to vector<1x128xf32>
    %7 = arith.addf %4, %6 : vector<1x128xf32>
    %c0_4 = arith.constant 0 : index
    %c0_5 = arith.constant 0 : index
    %8 = vector.load %arg6[%c0_4, %c0_5] : memref<1x128xf32, #tpu.memory_space<vmem>>, vector<1x128xf32>
    tpu.vector_store %arg6[%c0_4, %c0_5], %7 {strides = array<i32>} : memref<1x128xf32, #tpu.memory_space<vmem>>, vector<1x128xf32>,
    %c0_6 = arith.constant 0 : index
    %c0_7 = arith.constant 0 : index
    %9 = vector.load %arg7[%c0_6, %c0_7] : memref<1x128xf32, #tpu.memory_space<vmem>>, vector<1x128xf32>
    %10 = arith.mulf %3, %3 : vector<256x128xf32>
    %cst_8 = arith.constant dense<0.000000e+00> : vector<128xf32>
    %11 = vector.multi_reduction <add>, %10, %cst_8 [0] : vector<256x128xf32> to vector<128xf32>
    %12 = vector.shape_cast %11 : vector<128xf32> to vector<1x128xf32>
    %13 = arith.addf %9, %12 : vector<1x128xf32>
    %c0_9 = arith.constant 0 : index
    %c0_10 = arith.constant 0 : index
    %14 = vector.load %arg7[%c0_9, %c0_10] : memref<1x128xf32, #tpu.memory_space<vmem>>, vector<1x128xf32>
    tpu.vector_store %arg7[%c0_9, %c0_10], %13 {strides = array<i32>} : memref<1x128xf32, #tpu.memory_space<vmem>>, vector<1x128xf32>,
    %c0_i32_11 = arith.constant 0 : i32
    %15 = arith.cmpi eq, %arg0, %c0_i32_11 : i32
    %16 = arith.extui %15 : i1 to i32
    %c0_i32_12 = arith.constant 0 : i32
    %17 = arith.cmpi ne, %16, %c0_i32_12 : i32
    scf.if %17 {
      %c0_13 = arith.constant 0 : index
      %c0_14 = arith.constant 0 : index
      %18 = vector.load %arg6[%c0_13, %c0_14] : memref<1x128xf32, #tpu.memory_space<vmem>>, vector<1x128xf32>
      %c0_15 = arith.constant 0 : index
      %c0_16 = arith.constant 0 : index
      %19 = vector.load %arg7[%c0_15, %c0_16] : memref<1x128xf32, #tpu.memory_space<vmem>>, vector<1x128xf32>
      %c32_i32 = arith.constant 32 : i32
      %20 = tpu.dynamic_rotate %18 by %c32_i32 dim 1 : vector<1x128xf32>, i32 -> vector<1x128xf32>
      %21 = arith.addf %18, %20 : vector<1x128xf32>
      %c32_i32_17 = arith.constant 32 : i32
      %22 = tpu.dynamic_rotate %19 by %c32_i32_17 dim 1 : vector<1x128xf32>, i32 -> vector<1x128xf32>
      %23 = arith.addf %19, %22 : vector<1x128xf32>
      %c64_i32 = arith.constant 64 : i32
      %24 = tpu.dynamic_rotate %21 by %c64_i32 dim 1 : vector<1x128xf32>, i32 -> vector<1x128xf32>
      %25 = arith.addf %21, %24 : vector<1x128xf32>
      %c64_i32_18 = arith.constant 64 : i32
      %26 = tpu.dynamic_rotate %23 by %c64_i32_18 dim 1 : vector<1x128xf32>, i32 -> vector<1x128xf32>
      %27 = arith.addf %23, %26 : vector<1x128xf32>
      %cst_19 = arith.constant 9.765625E-4 : f32
      %28 = vector.broadcast %cst_19 : f32 to vector<1x128xf32>
      %29 = arith.mulf %25, %28 : vector<1x128xf32>
      %cst_20 = arith.constant 9.765625E-4 : f32
      %30 = vector.broadcast %cst_20 : f32 to vector<1x128xf32>
      %31 = arith.mulf %27, %30 : vector<1x128xf32>
      %32 = arith.mulf %29, %29 : vector<1x128xf32>
      %33 = arith.subf %31, %32 : vector<1x128xf32>
      %c0_21 = arith.constant 0 : index
      %c0_22 = arith.constant 0 : index
      %34 = vector.load %arg2[%c0_21, %c0_22] : memref<1x128xf32, #tpu.memory_space<vmem>>, vector<1x128xf32>
      %cst_23 = arith.constant 9.99999974E-6 : f32
      %35 = vector.broadcast %cst_23 : f32 to vector<1x128xf32>
      %36 = arith.addf %33, %35 : vector<1x128xf32>
      %37 = math.rsqrt %36 : vector<1x128xf32>
      %38 = arith.mulf %34, %37 : vector<1x128xf32>
      %c0_24 = arith.constant 0 : index
      %c0_25 = arith.constant 0 : index
      %39 = vector.load %arg4[%c0_24, %c0_25] : memref<1x128xf32, #tpu.memory_space<vmem>>, vector<1x128xf32>
      tpu.vector_store %arg4[%c0_24, %c0_25], %38 {strides = array<i32>} : memref<1x128xf32, #tpu.memory_space<vmem>>, vector<1x128xf32>,
      %c0_26 = arith.constant 0 : index
      %c0_27 = arith.constant 0 : index
      %40 = vector.load %arg3[%c0_26, %c0_27] : memref<1x128xf32, #tpu.memory_space<vmem>>, vector<1x128xf32>
      %41 = arith.mulf %29, %38 : vector<1x128xf32>
      %42 = arith.subf %40, %41 : vector<1x128xf32>
      %c0_28 = arith.constant 0 : index
      %c0_29 = arith.constant 0 : index
      %43 = vector.load %arg5[%c0_28, %c0_29] : memref<1x128xf32, #tpu.memory_space<vmem>>, vector<1x128xf32>
      tpu.vector_store %arg5[%c0_28, %c0_29], %42 {strides = array<i32>} : memref<1x128xf32, #tpu.memory_space<vmem>>, vector<1x128xf32>,
    } else {
    }
    return
  }
  func.func @transform_0(%arg0: i32) -> (i32, i32) {
    %c0_i32 = arith.constant 0 : i32
    %c0_i32_0 = arith.constant 0 : i32
    return %arg0, %c0_i32 : i32, i32
  }
  func.func @transform_1(%arg0: i32) -> (i32, i32) {
    %c0_i32 = arith.constant 0 : i32
    %c0_i32_0 = arith.constant 0 : i32
    %c0_i32_1 = arith.constant 0 : i32
    return %c0_i32, %c0_i32_0 : i32, i32
  }
  func.func @transform_2(%arg0: i32) -> (i32, i32) {
    %c0_i32 = arith.constant 0 : i32
    %c0_i32_0 = arith.constant 0 : i32
    %c0_i32_1 = arith.constant 0 : i32
    return %c0_i32, %c0_i32_0 : i32, i32
  }
  func.func @transform_3(%arg0: i32) -> (i32, i32) {
    %c0_i32 = arith.constant 0 : i32
    %c0_i32_0 = arith.constant 0 : i32
    %c0_i32_1 = arith.constant 0 : i32
    return %c0_i32, %c0_i32_0 : i32, i32
  }
  func.func @transform_4(%arg0: i32) -> (i32, i32) {
    %c0_i32 = arith.constant 0 : i32
    %c0_i32_0 = arith.constant 0 : i32
    %c0_i32_1 = arith.constant 0 : i32
    return %c0_i32, %c0_i32_0 : i32, i32
  }
}

</mosaic_0001>

<bundles_post_ra>
// kernel: tpu_custom_call.1
= control target key start
LH: loop header
LB: loop body
LE: loop exit
PB: predicated region body
PF: predicated region fallthrough
CT: control target
= control target key end

     0   :  { %10 = vsyncpa [#allocation5], 0  ;;  %s398_s0 = inlined_call_operand.hbm [shape: f32[256,128], index: 0, kind: input, shape index: {}]   ;;  %s399_s1 = inlined_call_operand.vmem [shape: f32[1,128], index: 1, kind: input, shape index: {}]   ;;  %s400_s2 = inlined_call_operand.vmem [shape: f32[1,128], index: 2, kind: input, shape index: {}]   ;;  %s401_s3 = inlined_call_operand.hbm [shape: f32[1,128], index: 3, kind: output, shape index: {0}]   ;;  %s402_s4 = inlined_call_operand.hbm [shape: f32[1,128], index: 4, kind: output, shape index: {1}]  }
   0x1   :  { %11 = vsyncpa [#allocation6], 0 }
   0x2   :  { %12 = vsyncpa [#allocation9], 0  ;;  %s323_s15 = smov [#allocation4]   ;;  %s251_s19 = scalar_lea.hbm %s398_s0, 4096 }
   0x3   :  { %s18_s16 = sshll.u32 %s323_s15, 4  ;;  %p252_p0 = scmp.ne.s32.totalorder %s398_s0, %s251_s19  ;;  %s19_s16 = int_to_ptr.vmem [resolvable:$true] %s18_s16 }
   0x4   :  { %p255_p1 = scmp.lt.u32.totalorder %s251_s19, %s398_s0 }
   0x6   :  { %p257_p2 = pnand %p255_p1, %p252_p0 }
   0x8   :  { %260 = shalt.err (!%p257_p2)
}
   0x9   :  { %s261_s24 = scalar_lea.vmem %s19_s16, 4096  ;;  %p266_p4 = scmp.lt.s32.totalorder %s19_s16, %s19_s16 }
   0xa   :  { %p262_p3 = scmp.ne.s32.totalorder %s19_s16, %s261_s24  ;;  %p267_p5 = scmp.lt.s32.totalorder %s261_s24, %s261_s24 }
   0xc   :  { %p268_p6 = por %p267_p5, %p266_p4 }
   0xe   :  { %p269_p7 = pnand %p268_p6, %p262_p3 }
  0x10   :  { %272 = shalt.err (!%p269_p7)
}
  0x11   :  { %s324_s25 = smov 128   ;;  %s325_s26 = smov 8  }
  0x12   :  { %24 = dma.hbm_to_vmem [thread:$0]  %s398_s0, 4096, %s19_s16, [#allocation5], %s324_s25, %s324_s25, %s325_s26  }
  0x13   :  { %317 = dma.done.wait [#allocation5], 4096  }
  0x14   :  { %318 = vsyncadd [#allocation5], 4294963200  ;;  %v326_v0 = vmov 0.0   ;;  %v38_v1 = vld [vmem:[#allocation4] sm:$0xff]  ;;  %v39_v2 = vld [vmem:[#allocation4 + $0x8] sm:$0xff]  ;;  %s327_s0 = smov 32  }
  0x15   :  { %36 = vst [vmem:[#allocation2] sm:$0x1] %v326_v0  ;;  %37 = vst [vmem:[#allocation3] sm:$0x1] %v326_v0  ;;  %v40_v3 = vld [vmem:[#allocation4 + $0x10] sm:$0xff]  ;;  %v71_v4 = vadd.f32 %v39_v2, %v38_v1  ;;  %v111_v5 = vmul.f32 %v38_v1, %v38_v1  ;;  %v112_v6 = vmul.f32 %v39_v2, %v39_v2  ;;  %v41_v7 = vld [vmem:[#allocation4 + $0x18] sm:$0xff] }
  0x16   :  { %v113_v8 = vmul.f32 %v40_v3, %v40_v3  ;;  %v42_v10 = vld [vmem:[#allocation4 + $0x20] sm:$0xff]  ;;  %v114_v11 = vmul.f32 %v41_v7, %v41_v7  ;;  %v43_v14 = vld [vmem:[#allocation4 + $0x28] sm:$0xff]  ;;  %v44_v18 = vld [vmem:[#allocation4 + $0x30] sm:$0xff]  ;;  %s328_s29 = smov 64   ;;  %s329_s6 = smov [#allocation7]  }
  0x17   :  { %v72_v9 = vadd.f32 %v71_v4, %v40_v3  ;;  %v143_v12 = vadd.f32 %v112_v6, %v111_v5  ;;  %v115_v15 = vmul.f32 %v42_v10, %v42_v10  ;;  %v116_v19 = vmul.f32 %v43_v14, %v43_v14  ;;  %v45_v22 = vld [vmem:[#allocation4 + $0x38] sm:$0xff]  ;;  %v46_v26 = vld [vmem:[#allocation4 + $0x40] sm:$0xff]  ;;  %v47_v30 = vld [vmem:[#allocation4 + $0x48] sm:$0xff]  ;;  %s218_s7 = sshll.u32 %s329_s6, 4  ;;  %s330_s10 = smov [#allocation8]   ;;  %s219_s7 = int_to_ptr.vmem [resolvable:$true] %s218_s7 }
  0x18   :  { %v117_v23 = vmul.f32 %v44_v18, %v44_v18  ;;  %v118_v27 = vmul.f32 %v45_v22, %v45_v22  ;;  %v119_v31 = vmul.f32 %v46_v26, %v46_v26  ;;  %v48_v34 = vld [vmem:[#allocation4 + $0x50] sm:$0xff]  ;;  %v120_v35 = vmul.f32 %v47_v30, %v47_v30  ;;  %v49_v38 = vld [vmem:[#allocation4 + $0x58] sm:$0xff]  ;;  %v50_v42 = vld [vmem:[#allocation4 + $0x60] sm:$0xff]  ;;  %s228_s11 = sshll.u32 %s330_s10, 4  ;;  %s273_s12 = scalar_lea.vmem %s219_s7, 16  ;;  %s229_s11 = int_to_ptr.vmem [resolvable:$true] %s228_s11 }
  0x19   :  { %v73_v13 = vadd.f32 %v72_v9, %v41_v7  ;;  %v144_v16 = vadd.f32 %v143_v12, %v113_v8  ;;  %v121_v39 = vmul.f32 %v48_v34, %v48_v34  ;;  %v122_v43 = vmul.f32 %v49_v38, %v49_v38  ;;  %v51_v46 = vld [vmem:[#allocation4 + $0x68] sm:$0xff]  ;;  %v52_v50 = vld [vmem:[#allocation4 + $0x70] sm:$0xff]  ;;  %v53_v54 = vld [vmem:[#allocation4 + $0x78] sm:$0xff]  ;;  %p274_p8 = scmp.ne.s32.totalorder %s219_s7, %s273_s12  ;;  %s277_s13 = scalar_lea.vmem %s219_s7, 32 }
  0x1a   :  { %v123_v47 = vmul.f32 %v50_v42, %v50_v42  ;;  %v124_v51 = vmul.f32 %v51_v46, %v51_v46  ;;  %v125_v55 = vmul.f32 %v52_v50, %v52_v50  ;;  %v54_v58 = vld [vmem:[#allocation4 + $0x80] sm:$0xff]  ;;  %v126_v59 = vmul.f32 %v53_v54, %v53_v54  ;;  %v55_v62 = vld [vmem:[#allocation4 + $0x88] sm:$0xff]  ;;  %v56_v2 = vld [vmem:[#allocation4 + $0x90] sm:$0xff]  ;;  %p278_p9 = scmp.lt.s32.totalorder %s219_s7, %s219_s7  ;;  %p279_p10 = scmp.lt.s32.totalorder %s277_s13, %s273_s12 }
  0x1b   :  { %v74_v17 = vadd.f32 %v73_v13, %v42_v10  ;;  %v145_v20 = vadd.f32 %v144_v16, %v114_v11  ;;  %v127_v63 = vmul.f32 %v54_v58, %v54_v58  ;;  %v128_v3 = vmul.f32 %v55_v62, %v55_v62  ;;  %v57_v6 = vld [vmem:[#allocation4 + $0x98] sm:$0xff]  ;;  %v58_v10 = vld [vmem:[#allocation4 + $0xa0] sm:$0xff] }
  0x1c   :  { %v129_v7 = vmul.f32 %v56_v2, %v56_v2  ;;  %v130_v11 = vmul.f32 %v57_v6, %v57_v6  ;;  %p280_p11 = por %p279_p10, %p278_p9 }
  0x1d   :  { %v75_v21 = vadd.f32 %v74_v17, %v43_v14  ;;  %v146_v24 = vadd.f32 %v145_v20, %v115_v15  ;;  %v59_v14 = vld [vmem:[#allocation4 + $0xa8] sm:$0xff]  ;;  %v131_v15 = vmul.f32 %v58_v10, %v58_v10 }
  0x1e   :  { %p281_p12 = pnand %p280_p11, %p274_p8 }
  0x1f   :  { %v76_v25 = vadd.f32 %v75_v21, %v44_v18  ;;  %v147_v28 = vadd.f32 %v146_v24, %v116_v19  ;;  %v60_v18 = vld [vmem:[#allocation4 + $0xb0] sm:$0xff]  ;;  %v132_v19 = vmul.f32 %v59_v14, %v59_v14 }
  0x21   :  { %v77_v29 = vadd.f32 %v76_v25, %v45_v22  ;;  %v148_v32 = vadd.f32 %v147_v28, %v117_v23  ;;  %v61_v22 = vld [vmem:[#allocation4 + $0xb8] sm:$0xff]  ;;  %v133_v23 = vmul.f32 %v60_v18, %v60_v18 }
  0x23   :  { %v78_v33 = vadd.f32 %v77_v29, %v46_v26  ;;  %v149_v36 = vadd.f32 %v148_v32, %v118_v27  ;;  %v62_v26 = vld [vmem:[#allocation4 + $0xc0] sm:$0xff]  ;;  %v134_v27 = vmul.f32 %v61_v22, %v61_v22 }
  0x25   :  { %v79_v37 = vadd.f32 %v78_v33, %v47_v30  ;;  %v150_v40 = vadd.f32 %v149_v36, %v119_v31  ;;  %v63_v30 = vld [vmem:[#allocation4 + $0xc8] sm:$0xff]  ;;  %v135_v31 = vmul.f32 %v62_v26, %v62_v26 }
  0x27   :  { %v80_v41 = vadd.f32 %v79_v37, %v48_v34  ;;  %v151_v44 = vadd.f32 %v150_v40, %v120_v35  ;;  %v64_v34 = vld [vmem:[#allocation4 + $0xd0] sm:$0xff]  ;;  %v136_v35 = vmul.f32 %v63_v30, %v63_v30 }
  0x29   :  { %v81_v45 = vadd.f32 %v80_v41, %v49_v38  ;;  %v152_v48 = vadd.f32 %v151_v44, %v121_v39  ;;  %v65_v38 = vld [vmem:[#allocation4 + $0xd8] sm:$0xff]  ;;  %v137_v39 = vmul.f32 %v64_v34, %v64_v34 }
  0x2b   :  { %v82_v49 = vadd.f32 %v81_v45, %v50_v42  ;;  %v153_v52 = vadd.f32 %v152_v48, %v122_v43  ;;  %v66_v42 = vld [vmem:[#allocation4 + $0xe0] sm:$0xff]  ;;  %v138_v43 = vmul.f32 %v65_v38, %v65_v38 }
  0x2d   :  { %v83_v53 = vadd.f32 %v82_v49, %v51_v46  ;;  %v154_v56 = vadd.f32 %v153_v52, %v123_v47  ;;  %v67_v46 = vld [vmem:[#allocation4 + $0xe8] sm:$0xff]  ;;  %v139_v47 = vmul.f32 %v66_v42, %v66_v42 }
  0x2f   :  { %v84_v57 = vadd.f32 %v83_v53, %v52_v50  ;;  %v155_v60 = vadd.f32 %v154_v56, %v124_v51  ;;  %v68_v50 = vld [vmem:[#allocation4 + $0xf0] sm:$0xff]  ;;  %v140_v51 = vmul.f32 %v67_v46, %v67_v46 }
  0x31   :  { %v85_v61 = vadd.f32 %v84_v57, %v53_v54  ;;  %v156_v0 = vadd.f32 %v155_v60, %v125_v55  ;;  %v69_v54 = vld [vmem:[#allocation4 + $0xf8] sm:$0xff]  ;;  %v141_v55 = vmul.f32 %v68_v50, %v68_v50 }
  0x33   :  { %v86_v1 = vadd.f32 %v85_v61, %v54_v58  ;;  %v157_v4 = vadd.f32 %v156_v0, %v126_v59  ;;  %v142_v58 = vmul.f32 %v69_v54, %v69_v54 }
  0x35   :  { %v87_v5 = vadd.f32 %v86_v1, %v55_v62  ;;  %v158_v8 = vadd.f32 %v157_v4, %v127_v63 }
  0x37   :  { %v88_v9 = vadd.f32 %v87_v5, %v56_v2  ;;  %v159_v12 = vadd.f32 %v158_v8, %v128_v3 }
  0x39   :  { %v89_v13 = vadd.f32 %v88_v9, %v57_v6  ;;  %v160_v16 = vadd.f32 %v159_v12, %v129_v7  ;;  %v70_v7 = vld [vmem:[#allocation2] sm:$0x1]  ;;  %v110_v12 = vld [vmem:[#allocation3] sm:$0x1] }
  0x3b   :  { %v90_v17 = vadd.f32 %v89_v13, %v58_v10  ;;  %v161_v20 = vadd.f32 %v160_v16, %v130_v11 }
  0x3d   :  { %v91_v21 = vadd.f32 %v90_v17, %v59_v14  ;;  %v162_v24 = vadd.f32 %v161_v20, %v131_v15 }
  0x3f   :  { %v92_v25 = vadd.f32 %v91_v21, %v60_v18  ;;  %v163_v28 = vadd.f32 %v162_v24, %v132_v19 }
  0x41   :  { %v93_v29 = vadd.f32 %v92_v25, %v61_v22  ;;  %v164_v32 = vadd.f32 %v163_v28, %v133_v23 }
  0x43   :  { %v94_v33 = vadd.f32 %v93_v29, %v62_v26  ;;  %v165_v36 = vadd.f32 %v164_v32, %v134_v27 }
  0x45   :  { %v95_v37 = vadd.f32 %v94_v33, %v63_v30  ;;  %v166_v40 = vadd.f32 %v165_v36, %v135_v31  ;;  %v203_v30 = vld [vmem:[%s399_s1] sm:$0x1] }
  0x46   :  { %v208_v33 = vld [vmem:[%s400_s2] sm:$0x1] }
  0x47   :  { %v96_v41 = vadd.f32 %v95_v37, %v64_v34  ;;  %v167_v44 = vadd.f32 %v166_v40, %v136_v35 }
  0x49   :  { %v97_v45 = vadd.f32 %v96_v41, %v65_v38  ;;  %v168_v48 = vadd.f32 %v167_v44, %v137_v39 }
  0x4b   :  { %v98_v49 = vadd.f32 %v97_v45, %v66_v42  ;;  %v169_v52 = vadd.f32 %v168_v48, %v138_v43 }
  0x4d   :  { %v99_v53 = vadd.f32 %v98_v49, %v67_v46  ;;  %v170_v56 = vadd.f32 %v169_v52, %v139_v47 }
  0x4f   :  { %v100_v57 = vadd.f32 %v99_v53, %v68_v50  ;;  %v171_v59 = vadd.f32 %v170_v56, %v140_v51 }
  0x51   :  { %v101_v60 = vadd.f32 %v100_v57, %v69_v54  ;;  %v172_v61 = vadd.f32 %v171_v59, %v141_v55 }
  0x53   :  { %v102_v62 = vrot.slane %v101_v60, 4  ;;  %v173_v63 = vadd.f32 %v172_v61, %v142_v58 }
  0x55   :  { %v103_v0 = vadd.f32 %v102_v62, %v101_v60  ;;  %v174_v1 = vrot.slane %v173_v63, 4 }
  0x57   :  { %v104_v2 = vrot.slane %v103_v0, 2  ;;  %v175_v3 = vadd.f32 %v174_v1, %v173_v63 }
  0x59   :  { %v105_v4 = vadd.f32 %v104_v2, %v103_v0  ;;  %v176_v5 = vrot.slane %v175_v3, 2 }
  0x5b   :  { %v106_v6 = vrot.slane %v105_v4, 1  ;;  %v177_v8 = vadd.f32 %v176_v5, %v175_v3 }
  0x5d   :  { %v107_v9 = vadd.f32 %v106_v6, %v105_v4  ;;  %v178_v10 = vrot.slane %v177_v8, 1 }
  0x5f   :  { %v108_v11 = vadd.f32 %v107_v9, %v70_v7  ;;  %v179_v13 = vadd.f32 %v178_v10, %v177_v8 }
  0x61   :  { %109 = vst [vmem:[#allocation2] sm:$0x1] %v108_v11  ;;  %v180_v14 = vadd.f32 %v179_v13, %v110_v12 }
  0x63   :  { %181 = vst [vmem:[#allocation3] sm:$0x1] %v180_v14 }
  0x68   :  { %v185_v15 = vld [vmem:[#allocation2] sm:$0x1] }
  0x69   :  { %187 = vrot.lane.b32.xlu0 %v185_v15, %s327_s0 }
  0x6a   :  { %v186_v16 = vld [vmem:[#allocation3] sm:$0x1] }
  0x6d   :  { %190 = vrot.lane.b32.xlu0 %v186_v16, %s327_s0 }
  0xdb   :  { %v188_v17 = vpop.permute.xlu0 %187 }
  0xdc   :  { %v189_v18 = vadd.f32 %v188_v17, %v185_v15 }
  0xde   :  { %193 = vrot.lane.b32.xlu1 %v189_v18, %s328_s29 }
  0xdf   :  { %v191_v19 = vpop.permute.xlu0 %190 }
  0xe0   :  { %v192_v20 = vadd.f32 %v191_v19, %v186_v16 }
  0xe2   :  { %196 = vrot.lane.b32.xlu1 %v192_v20, %s328_s29 }
 0x150   :  { %v194_v21 = vpop.permute.xlu1 %193 }
 0x151   :  { %v195_v22 = vadd.f32 %v194_v21, %v189_v18 }
 0x153   :  { %v199_v23 = vmul.f32 0.0009765625, %v195_v22 }
 0x154   :  { %v197_v24 = vpop.permute.xlu1 %196 }
 0x155   :  { %v198_v25 = vadd.f32 %v197_v24, %v192_v20  ;;  %v201_v26 = vmul.f32 %v199_v23, %v199_v23 }
 0x157   :  { %v200_v27 = vmul.f32 0.0009765625, %v198_v25 }
 0x159   :  { %v202_v28 = vsub.f32 %v200_v27, %v201_v26 }
 0x15b   :  { %v204_v29 = vadd.f32 1e-05, %v202_v28 }
 0x15d   :  { %249 = vrsqrt.f32 %v204_v29 }
 0x167   :  { %v250_v31 = vpop.eup %249 }
 0x168   :  { %v206_v32 = vmul.f32 %v250_v31, %v203_v30 }
 0x16a   :  { %207 = vst [vmem:[#allocation7] sm:$0x1] %v206_v32  ;;  %v209_v34 = vmul.f32 %v206_v32, %v199_v23 }
 0x16b   :  { %284 = shalt.err (!%p281_p12)
}
 0x16c   :  { %s285_s15 = scalar_lea.hbm %s401_s3, 16 }
 0x16d   :  { %p286_p13 = scmp.ne.s32.totalorder %s401_s3, %s285_s15  ;;  %p289_p0 = scmp.lt.u32.totalorder %s285_s15, %s401_s3 }
 0x16f   :  { %p291_p1 = pnand %p289_p0, %p286_p13 }
 0x171   :  { %294 = shalt.err (!%p291_p1)
}
 0x172   :  { %221 = dma.vmem_to_hbm [thread:$0]  %s219_s7, 16, %s401_s3, [#allocation6]   ;;  %v210_v35 = vsub.f32 %v208_v33, %v209_v34 }
 0x173   :  { %s295_s21 = scalar_lea.vmem %s229_s11, 16  ;;  %s299_s22 = scalar_lea.vmem %s229_s11, 32 }
 0x174   :  { %211 = vst [vmem:[#allocation8] sm:$0x1] %v210_v35  ;;  %p296_p2 = scmp.ne.s32.totalorder %s229_s11, %s295_s21  ;;  %p300_p3 = scmp.lt.s32.totalorder %s229_s11, %s229_s11 }
 0x175   :  { %p301_p4 = scmp.lt.s32.totalorder %s299_s22, %s295_s21 }
 0x177   :  { %p302_p5 = por %p301_p4, %p300_p3 }
 0x179   :  { %p303_p6 = pnand %p302_p5, %p296_p2 }
 0x17b   :  { %306 = shalt.err (!%p303_p6)
}
 0x17c   :  { %s307_s25 = scalar_lea.hbm %s402_s4, 16 }
 0x17d   :  { %p308_p7 = scmp.ne.s32.totalorder %s402_s4, %s307_s25  ;;  %p311_p8 = scmp.lt.u32.totalorder %s307_s25, %s402_s4 }
 0x17f   :  { %p313_p9 = pnand %p311_p8, %p308_p7 }
 0x181   :  { %316 = shalt.err (!%p313_p9)
}
 0x182   :  { %231 = dma.vmem_to_hbm [thread:$0]  %s229_s11, 16, %s402_s4, [#allocation9]  }
 0x183   :  { %319 = dma.done.wait [#allocation6], 16  }
 0x184   :  { %320 = vsyncadd [#allocation6], 4294967280 }
 0x185   :  { %321 = dma.done.wait [#allocation9], 16  }
 0x186   :  { %322 = vsyncadd [#allocation9], 4294967280 }
 0x187   :  { %238 = vsyncpa [#allocation5], 1 }
 0x188   :  { %239 = vsyncpa [#allocation6], 1 }
 0x189   :  { %240 = vsyncpa [#allocation9], 1 }

</bundles_post_ra>
